<compile_context>
chip_gen: v6e
topology: v6e:2x2x1
jax: 0.10.0
libtpu: 0.0.40
codegen_flags: <defaults>
</compile_context>

<pallas_src>
import functools

import jax
import jax.numpy as jnp
from jax.experimental import pallas as pl
from jax.experimental.pallas import tpu as pltpu

_LANE = 128
_SUBLANE = 8
_NEG_INF = -1e30
_HAS_BUFFERED = hasattr(pl, "Buffered")


def _round_up(x, m):
    return (x + m - 1) // m * m


def _cdiv(a, b):
    return (a + b - 1) // b


# ----------------------------- kernel ---------------------------------------


def _mlp_softmax_kernel(x_ref, w1_ref, b1_ref, w2_ref, b2_ref, w3_ref, b3_ref,
                        o_ref):
    """Linear->ReLU->Linear->ReLU->Linear->Softmax over one batch tile."""
    compute_dtype = w1_ref.dtype              # f32 or bf16 (MXU operand dtype)
    x = x_ref[...].astype(compute_dtype)

    # layer 1: Linear + ReLU (MXU matmul, f32 accumulate; bias/ReLU in f32)
    h1 = jnp.dot(x, w1_ref[...], preferred_element_type=jnp.float32)
    h1 = jnp.maximum(h1 + b1_ref[...], 0.0)

    # layer 2: Linear + ReLU
    h2 = jnp.dot(h1.astype(compute_dtype), w2_ref[...],
                 preferred_element_type=jnp.float32)
    h2 = jnp.maximum(h2 + b2_ref[...], 0.0)

    # output layer: Linear.  Padded logit lanes get a -1e30 f32 bias -> their
    # exp() underflows to exactly 0 below.  Logits must stay f32 here.
    logits = jnp.dot(h2.astype(compute_dtype), w3_ref[...],
                     preferred_element_type=jnp.float32)
    logits = logits + b3_ref[...]

    # numerically-stable softmax; denominator reciprocal on the EUP
    m = jnp.max(logits, axis=-1, keepdims=True)
    e = jnp.exp(logits - m)
    inv = pl.reciprocal(jnp.sum(e, axis=-1, keepdims=True), approx=True)
    o_ref[...] = (e * inv).astype(o_ref.dtype)


# ----------------------------- wrapper ---------------------------------------


def _resident_spec(shape, single_buffer):
    """BlockSpec for a weight/bias that stays resident across the whole grid."""
    kwargs = {}
    if single_buffer and _HAS_BUFFERED:
        kwargs["pipeline_mode"] = pl.Buffered(1)      # no double-buffering
    return pl.BlockSpec(shape, lambda i: (0, 0), **kwargs)


@functools.partial(
    jax.jit,
    static_argnames=("act_dim", "batch_tile", "single_buffer_weights",
                     "slice_output"))
def _dense_mlp_impl(obs, params, *, act_dim, batch_tile,
                    single_buffer_weights, slice_output):
    B, obs_dim = obs.shape
    w1, b1 = params["w1"], params["b1"]
    w2, b2 = params["w2"], params["b2"]
    w3, b3 = params["w3"], params["b3"]
    K, H = w1.shape                  # K = round_up(obs_dim, 8); H mult. of 128
    N = w3.shape[1]                  # padded act dim (mult. of 128)

    # ---- batch tiling: as large as possible (per-grid-step overhead dominates
    # since weights are resident), but give mid/large batches >= 2 grid steps
    # so both v7x TensorCores get work via dimension_semantics=("parallel",).
    if batch_tile is not None:
        tb = batch_tile
    else:
        tb = min(_round_up(B, _SUBLANE), 512)
        if B >= 256:
            tb = min(tb, _round_up(_cdiv(B, 2), _SUBLANE))
    Bp = _round_up(B, tb)

    # ---- minimal input padding: batch rows up to Bp, feature dim only up to a
    # sublane multiple (usually a no-op -> no 4x obs-byte amplification).
    if Bp != B or K != obs_dim:
        obs = jnp.pad(obs, ((0, Bp - B), (0, K - obs_dim)))

    grid = (Bp // tb,)

    in_specs = [
        pl.BlockSpec((tb, K), lambda i: (i, 0)),            # obs tile (streamed)
        _resident_spec((K, H), single_buffer_weights),       # W1
        _resident_spec((1, H), single_buffer_weights),       # b1
        _resident_spec((H, H), single_buffer_weights),       # W2
        _resident_spec((1, H), single_buffer_weights),       # b2
        _resident_spec((H, N), single_buffer_weights),       # W3
        _resident_spec((1, N), single_buffer_weights),       # b3 (-1e30 pads)
    ]
    out_spec = pl.BlockSpec((tb, N), lambda i: (i, 0))        # lane-dense stores

    # ---- VMEM budget: pipelined buffers + resident weights + live
    # intermediates, capped with headroom below v7x's 64 MiB physical VMEM.
    wbytes = jnp.dtype(w1.dtype).itemsize
    wbuf = 1 if single_buffer_weights else 2
    vmem_needed = (
        2 * tb * K * 4                                # obs double buffer
        + 2 * tb * N * 4                              # output double buffer
        + wbuf * (K * H + H * H + H * N) * wbytes     # weights
        + wbuf * (2 * H + N) * 4                      # biases
        + 4 * tb * H * 4 + 3 * tb * N * 4             # h1/h2/casts/logits/exp
    )
    vmem_limit = int(min(max(vmem_needed * 3 // 2 + (4 << 20), 16 << 20),
                         50 << 20))

    flops = 2 * Bp * (K * H + H * H + H * N)
    bytes_accessed = (
        Bp * K * 4
        + sum(int(v.size) * v.dtype.itemsize for v in (w1, b1, w2, b2, w3, b3))
        + Bp * N * 4)
    cost = pl.CostEstimate(flops=flops, transcendentals=Bp * N,
                           bytes_accessed=bytes_accessed)

    out_padded = pl.pallas_call(
        _mlp_softmax_kernel,
        out_shape=jax.ShapeDtypeStruct((Bp, N), jnp.float32),
        grid=grid,
        in_specs=in_specs,
        out_specs=out_spec,
        compiler_params=pltpu.CompilerParams(
            dimension_semantics=("parallel",),
            vmem_limit_bytes=vmem_limit),
        cost_estimate=cost,
    )(obs, w1, b1, w2, b2, w3, b3)

    if slice_output:
        return out_padded[:B, :act_dim]
    # Padded lanes are exactly 0 and rows >= B are meaningless; caller must
    # slice/ignore them.
    return out_padded


def dense_mlp(obs, params, *, act_dim, batch_tile=None, slice_output=True):
    """Fused DenseMlp forward.  `params` come from pad_params()."""
    if _HAS_BUFFERED:
        try:
            return _dense_mlp_impl(
                obs, params, act_dim=act_dim, batch_tile=batch_tile,
                single_buffer_weights=True, slice_output=slice_output)
        except Exception:
            # pl.Buffered(1) / pipeline_mode not supported by this JAX build:
            # fall back to default double-buffered resident weights.
            pass
    return _dense_mlp_impl(
        obs, params, act_dim=act_dim, batch_tile=batch_tile,
        single_buffer_weights=False, slice_output=slice_output)


# ----------------------- parameter construction ------------------------------


def init_params(key, obs_dim, act_dim, hidden):
    """PyTorch-nn.Linear-style init; weights stored as (in, out)."""
    k1, k2, k3, k4, k5, k6 = jax.random.split(key, 6)
    s1 = 1.0 / jnp.sqrt(obs_dim)
    s2 = 1.0 / jnp.sqrt(hidden)
    return {
        "w1": jax.random.uniform(k1, (obs_dim, hidden), jnp.float32, -s1, s1),
        "b1": jax.random.uniform(k2, (1, hidden), jnp.float32, -s1, s1),
        "w2": jax.random.uniform(k3, (hidden, hidden), jnp.float32, -s2, s2),
        "b2": jax.random.uniform(k4, (1, hidden), jnp.float32, -s2, s2),
        "w3": jax.random.uniform(k5, (hidden, act_dim), jnp.float32, -s2, s2),
        "b3": jax.random.uniform(k6, (1, act_dim), jnp.float32, -s2, s2),
    }


def pad_params(raw, obs_dim, act_dim, hidden, *, weight_dtype=jnp.bfloat16):
    """Pad params once, offline wrt the kernel.

    * obs features are only sublane-aligned (no 128-lane blow-up).
    * hidden / output dims are padded to lane multiples; padded hidden units
      get zero weights/bias -> ReLU(0)=0 -> no effect; padded output lanes get
      a -1e30 f32 bias -> exp underflows to 0 in the softmax.
    * Weights default to bf16 (MXU-native on v5e/v6e/v7x, halves resident
      VMEM + weight DMA); biases stay f32 (post-matmul math is f32).
    """
    Kp = _round_up(obs_dim, _SUBLANE)
    Hp = _round_up(hidden, _LANE)
    Np = _round_up(act_dim, _LANE)
    w1 = jnp.zeros((Kp, Hp), weight_dtype).at[:obs_dim, :hidden].set(
        raw["w1"].astype(weight_dtype))
    b1 = jnp.zeros((1, Hp), jnp.float32).at[:, :hidden].set(raw["b1"])
    w2 = jnp.zeros((Hp, Hp), weight_dtype).at[:hidden, :hidden].set(
        raw["w2"].astype(weight_dtype))
    b2 = jnp.zeros((1, Hp), jnp.float32).at[:, :hidden].set(raw["b2"])
    w3 = jnp.zeros((Hp, Np), weight_dtype).at[:hidden, :act_dim].set(
        raw["w3"].astype(weight_dtype))
    b3 = jnp.full((1, Np), _NEG_INF, jnp.float32).at[:, :act_dim].set(raw["b3"])
    return {"w1": w1, "b1": b1, "w2": w2, "b2": b2, "w3": w3, "b3": b3}


def _reference(obs, raw):
    hi = jax.lax.Precision.HIGHEST
    h1 = jnp.maximum(jnp.dot(obs, raw["w1"], precision=hi) + raw["b1"], 0.0)
    h2 = jnp.maximum(jnp.dot(h1, raw["w2"], precision=hi) + raw["b2"], 0.0)
    logits = jnp.dot(h2, raw["w3"], precision=hi) + raw["b3"]
    return jax.nn.softmax(logits, axis=-1)


# ------------------------------- demo ----------------------------------------

if __name__ == "__main__":
    key = jax.random.PRNGKey(0)
    k_obs, k_par, k_obs2 = jax.random.split(key, 3)

    OBS_DIM, ACT_DIM, HIDDEN = 32, 8, 256
    raw = init_params(k_par, OBS_DIM, ACT_DIM, HIDDEN)

    # ---- small batch (module-consistent shapes), f32 weights, tight check ----
    B = 8
    obs = jax.random.normal(k_obs, (B, OBS_DIM), jnp.float32)
    params_f32 = pad_params(raw, OBS_DIM, ACT_DIM, HIDDEN,
                            weight_dtype=jnp.float32)
    probs = jax.block_until_ready(dense_mlp(obs, params_f32, act_dim=ACT_DIM))
    ref = _reference(obs, raw)
    assert probs.shape == (B, ACT_DIM)
    assert jnp.allclose(probs, ref, atol=1e-3, rtol=1e-3), \
        float(jnp.max(jnp.abs(probs - ref)))
    assert jnp.allclose(jnp.sum(probs, axis=-1), 1.0, atol=2e-3)

    # ---- larger batch: multi-step grid (>=2 steps -> both v7x TCs), bf16 -----
    B2 = 512
    obs2 = jax.random.normal(k_obs2, (B2, OBS_DIM), jnp.float32)
    params_bf16 = pad_params(raw, OBS_DIM, ACT_DIM, HIDDEN)   # bf16 default
    probs2 = jax.block_until_ready(dense_mlp(obs2, params_bf16, act_dim=ACT_DIM))
    ref2 = _reference(obs2, raw)
    assert probs2.shape == (B2, ACT_DIM)
    assert jnp.allclose(probs2, ref2, atol=2e-2, rtol=2e-2), \
        float(jnp.max(jnp.abs(probs2 - ref2)))
    assert jnp.allclose(jnp.sum(probs2, axis=-1), 1.0, atol=2e-2)

    print("KERNEL_OK")
</pallas_src>

<mosaic_0001>
module attributes {stable_mosaic.version = 11 : i64} {
  func.func @_mlp_softmax_kernel(%arg0: i32, %arg1: memref<8x32xf32, #tpu.memory_space<vmem>>, %arg2: memref<32x256xf32, #tpu.memory_space<vmem>>, %arg3: memref<1x256xf32, #tpu.memory_space<vmem>>, %arg4: memref<256x256xf32, #tpu.memory_space<vmem>>, %arg5: memref<1x256xf32, #tpu.memory_space<vmem>>, %arg6: memref<256x128xf32, #tpu.memory_space<vmem>>, %arg7: memref<1x128xf32, #tpu.memory_space<vmem>>, %arg8: memref<8x128xf32, #tpu.memory_space<vmem>>) attributes {dimension_semantics = [#tpu.dimension_semantics<parallel>], iteration_bounds = array<i64: 1>, scalar_prefetch = 0 : i64, scratch_operands = 0 : i64, tpu.core_type = #tpu.core_type<tc>, window_params = [{transform_indices = @transform_0, window_bounds = array<i64: 8, 32>}, {pipeline_mode = #tpu.pipeline_mode<synchronous>, transform_indices = @transform_1, window_bounds = array<i64: 32, 256>}, {pipeline_mode = #tpu.pipeline_mode<synchronous>, transform_indices = @transform_2, window_bounds = array<i64: 1, 256>}, {pipeline_mode = #tpu.pipeline_mode<synchronous>, transform_indices = @transform_3, window_bounds = array<i64: 256, 256>}, {pipeline_mode = #tpu.pipeline_mode<synchronous>, transform_indices = @transform_4, window_bounds = array<i64: 1, 256>}, {pipeline_mode = #tpu.pipeline_mode<synchronous>, transform_indices = @transform_5, window_bounds = array<i64: 256, 128>}, {pipeline_mode = #tpu.pipeline_mode<synchronous>, transform_indices = @transform_6, window_bounds = array<i64: 1, 128>}, {transform_indices = @transform_7, window_bounds = array<i64: 8, 128>}]} {
    %c0 = arith.constant 0 : index
    %c0_0 = arith.constant 0 : index
    %0 = vector.load %arg1[%c0, %c0_0] : memref<8x32xf32, #tpu.memory_space<vmem>>, vector<8x32xf32>
    %c0_1 = arith.constant 0 : index
    %c0_2 = arith.constant 0 : index
    %1 = vector.load %arg2[%c0_1, %c0_2] : memref<32x256xf32, #tpu.memory_space<vmem>>, vector<32x256xf32>
    %cst = arith.constant dense<0.000000e+00> : vector<8x256xf32>
    %2 = tpu.matmul %0, %1, %cst {dimension_numbers = #tpu.dot_dimension_numbers<[1], [0], [0], [1], [0, 0, 1, 1], [], []>} : vector<8x32xf32>, vector<32x256xf32>, vector<8x256xf32> -> vector<8x256xf32>
    %c0_3 = arith.constant 0 : index
    %c0_4 = arith.constant 0 : index
    %3 = vector.load %arg3[%c0_3, %c0_4] : memref<1x256xf32, #tpu.memory_space<vmem>>, vector<1x256xf32>
    %4 = vector.broadcast %3 : vector<1x256xf32> to vector<8x256xf32>
    %5 = arith.addf %2, %4 : vector<8x256xf32>
    %cst_5 = arith.constant 0.000000e+00 : f32
    %6 = vector.broadcast %cst_5 : f32 to vector<8x256xf32>
    %7 = arith.maximumf %5, %6 : vector<8x256xf32>
    %c0_6 = arith.constant 0 : index
    %c0_7 = arith.constant 0 : index
    %8 = vector.load %arg4[%c0_6, %c0_7] : memref<256x256xf32, #tpu.memory_space<vmem>>, vector<256x256xf32>
    %cst_8 = arith.constant dense<0.000000e+00> : vector<8x256xf32>
    %9 = tpu.matmul %7, %8, %cst_8 {dimension_numbers = #tpu.dot_dimension_numbers<[1], [0], [0], [1], [0, 0, 1, 1], [], []>} : vector<8x256xf32>, vector<256x256xf32>, vector<8x256xf32> -> vector<8x256xf32>
    %c0_9 = arith.constant 0 : index
    %c0_10 = arith.constant 0 : index
    %10 = vector.load %arg5[%c0_9, %c0_10] : memref<1x256xf32, #tpu.memory_space<vmem>>, vector<1x256xf32>
    %11 = vector.broadcast %10 : vector<1x256xf32> to vector<8x256xf32>
    %12 = arith.addf %9, %11 : vector<8x256xf32>
    %cst_11 = arith.constant 0.000000e+00 : f32
    %13 = vector.broadcast %cst_11 : f32 to vector<8x256xf32>
    %14 = arith.maximumf %12, %13 : vector<8x256xf32>
    %c0_12 = arith.constant 0 : index
    %c0_13 = arith.constant 0 : index
    %15 = vector.load %arg6[%c0_12, %c0_13] : memref<256x128xf32, #tpu.memory_space<vmem>>, vector<256x128xf32>
    %cst_14 = arith.constant dense<0.000000e+00> : vector<8x128xf32>
    %16 = tpu.matmul %14, %15, %cst_14 {dimension_numbers = #tpu.dot_dimension_numbers<[1], [0], [0], [1], [0, 0, 1, 1], [], []>} : vector<8x256xf32>, vector<256x128xf32>, vector<8x128xf32> -> vector<8x128xf32>
    %c0_15 = arith.constant 0 : index
    %c0_16 = arith.constant 0 : index
    %17 = vector.load %arg7[%c0_15, %c0_16] : memref<1x128xf32, #tpu.memory_space<vmem>>, vector<1x128xf32>
    %18 = vector.broadcast %17 : vector<1x128xf32> to vector<8x128xf32>
    %19 = arith.addf %16, %18 : vector<8x128xf32>
    %cst_17 = arith.constant dense<0xFF800000> : vector<8xf32>
    %20 = vector.multi_reduction <maximumf>, %19, %cst_17 [1] : vector<8x128xf32> to vector<8xf32>
    %21 = vector.shape_cast %20 : vector<8xf32> to vector<8x1xf32>
    %22 = vector.broadcast %21 : vector<8x1xf32> to vector<8x128xf32>
    %23 = arith.subf %19, %22 : vector<8x128xf32>
    %24 = math.exp %23 : vector<8x128xf32>
    %cst_18 = arith.constant dense<0.000000e+00> : vector<8xf32>
    %25 = vector.multi_reduction <add>, %24, %cst_18 [1] : vector<8x128xf32> to vector<8xf32>
    %26 = vector.shape_cast %25 : vector<8xf32> to vector<8x1xf32>
    %27 = tpu.reciprocal %26 {approx = true} : vector<8x1xf32> -> vector<8x1xf32>
    %28 = vector.broadcast %27 : vector<8x1xf32> to vector<8x128xf32>
    %29 = arith.mulf %24, %28 : vector<8x128xf32>
    %c0_19 = arith.constant 0 : index
    %c0_20 = arith.constant 0 : index
    %30 = vector.load %arg8[%c0_19, %c0_20] : memref<8x128xf32, #tpu.memory_space<vmem>>, vector<8x128xf32>
    tpu.vector_store %arg8[%c0_19, %c0_20], %29 {strides = array<i32>} : memref<8x128xf32, #tpu.memory_space<vmem>>, vector<8x128xf32>,
    return
  }
  func.func @transform_0(%arg0: i32) -> (i32, i32) {
    %c0_i32 = arith.constant 0 : i32
    %c0_i32_0 = arith.constant 0 : i32
    return %arg0, %c0_i32 : i32, i32
  }
  func.func @transform_1(%arg0: i32) -> (i32, i32) {
    %c0_i32 = arith.constant 0 : i32
    %c0_i32_0 = arith.constant 0 : i32
    %c0_i32_1 = arith.constant 0 : i32
    return %c0_i32, %c0_i32_0 : i32, i32
  }
  func.func @transform_2(%arg0: i32) -> (i32, i32) {
    %c0_i32 = arith.constant 0 : i32
    %c0_i32_0 = arith.constant 0 : i32
    %c0_i32_1 = arith.constant 0 : i32
    return %c0_i32, %c0_i32_0 : i32, i32
  }
  func.func @transform_3(%arg0: i32) -> (i32, i32) {
    %c0_i32 = arith.constant 0 : i32
    %c0_i32_0 = arith.constant 0 : i32
    %c0_i32_1 = arith.constant 0 : i32
    return %c0_i32, %c0_i32_0 : i32, i32
  }
  func.func @transform_4(%arg0: i32) -> (i32, i32) {
    %c0_i32 = arith.constant 0 : i32
    %c0_i32_0 = arith.constant 0 : i32
    %c0_i32_1 = arith.constant 0 : i32
    return %c0_i32, %c0_i32_0 : i32, i32
  }
  func.func @transform_5(%arg0: i32) -> (i32, i32) {
    %c0_i32 = arith.constant 0 : i32
    %c0_i32_0 = arith.constant 0 : i32
    %c0_i32_1 = arith.constant 0 : i32
    return %c0_i32, %c0_i32_0 : i32, i32
  }
  func.func @transform_6(%arg0: i32) -> (i32, i32) {
    %c0_i32 = arith.constant 0 : i32
    %c0_i32_0 = arith.constant 0 : i32
    %c0_i32_1 = arith.constant 0 : i32
    return %c0_i32, %c0_i32_0 : i32, i32
  }
  func.func @transform_7(%arg0: i32) -> (i32, i32) {
    %c0_i32 = arith.constant 0 : i32
    %c0_i32_0 = arith.constant 0 : i32
    return %arg0, %c0_i32 : i32, i32
  }
}

module attributes {stable_mosaic.version = 11 : i64} {
  func.func @_mlp_softmax_kernel(%arg0: i32, %arg1: memref<8x32xf32, #tpu.memory_space<vmem>>, %arg2: memref<32x256xf32, #tpu.memory_space<vmem>>, %arg3: memref<1x256xf32, #tpu.memory_space<vmem>>, %arg4: memref<256x256xf32, #tpu.memory_space<vmem>>, %arg5: memref<1x256xf32, #tpu.memory_space<vmem>>, %arg6: memref<256x128xf32, #tpu.memory_space<vmem>>, %arg7: memref<1x128xf32, #tpu.memory_space<vmem>>, %arg8: memref<8x128xf32, #tpu.memory_space<vmem>>) attributes {dimension_semantics = [#tpu.dimension_semantics<parallel>], iteration_bounds = array<i64: 1>, scalar_prefetch = 0 : i64, scratch_operands = 0 : i64, tpu.core_type = #tpu.core_type<tc>, window_params = [{transform_indices = @transform_0, window_bounds = array<i64: 8, 32>}, {pipeline_mode = #tpu.pipeline_mode<synchronous>, transform_indices = @transform_1, window_bounds = array<i64: 32, 256>}, {pipeline_mode = #tpu.pipeline_mode<synchronous>, transform_indices = @transform_2, window_bounds = array<i64: 1, 256>}, {pipeline_mode = #tpu.pipeline_mode<synchronous>, transform_indices = @transform_3, window_bounds = array<i64: 256, 256>}, {pipeline_mode = #tpu.pipeline_mode<synchronous>, transform_indices = @transform_4, window_bounds = array<i64: 1, 256>}, {pipeline_mode = #tpu.pipeline_mode<synchronous>, transform_indices = @transform_5, window_bounds = array<i64: 256, 128>}, {pipeline_mode = #tpu.pipeline_mode<synchronous>, transform_indices = @transform_6, window_bounds = array<i64: 1, 128>}, {transform_indices = @transform_7, window_bounds = array<i64: 8, 128>}]} {
    %c0 = arith.constant 0 : index
    %c0_0 = arith.constant 0 : index
    %0 = vector.load %arg1[%c0, %c0_0] : memref<8x32xf32, #tpu.memory_space<vmem>>, vector<8x32xf32>
    %c0_1 = arith.constant 0 : index
    %c0_2 = arith.constant 0 : index
    %1 = vector.load %arg2[%c0_1, %c0_2] : memref<32x256xf32, #tpu.memory_space<vmem>>, vector<32x256xf32>
    %cst = arith.constant dense<0.000000e+00> : vector<8x256xf32>
    %2 = tpu.matmul %0, %1, %cst {dimension_numbers = #tpu.dot_dimension_numbers<[1], [0], [0], [1], [0, 0, 1, 1], [], []>} : vector<8x32xf32>, vector<32x256xf32>, vector<8x256xf32> -> vector<8x256xf32>
    %c0_3 = arith.constant 0 : index
    %c0_4 = arith.constant 0 : index
    %3 = vector.load %arg3[%c0_3, %c0_4] : memref<1x256xf32, #tpu.memory_space<vmem>>, vector<1x256xf32>
    %4 = vector.broadcast %3 : vector<1x256xf32> to vector<8x256xf32>
    %5 = arith.addf %2, %4 : vector<8x256xf32>
    %cst_5 = arith.constant 0.000000e+00 : f32
    %6 = vector.broadcast %cst_5 : f32 to vector<8x256xf32>
    %7 = arith.maximumf %5, %6 : vector<8x256xf32>
    %c0_6 = arith.constant 0 : index
    %c0_7 = arith.constant 0 : index
    %8 = vector.load %arg4[%c0_6, %c0_7] : memref<256x256xf32, #tpu.memory_space<vmem>>, vector<256x256xf32>
    %cst_8 = arith.constant dense<0.000000e+00> : vector<8x256xf32>
    %9 = tpu.matmul %7, %8, %cst_8 {dimension_numbers = #tpu.dot_dimension_numbers<[1], [0], [0], [1], [0, 0, 1, 1], [], []>} : vector<8x256xf32>, vector<256x256xf32>, vector<8x256xf32> -> vector<8x256xf32>
    %c0_9 = arith.constant 0 : index
    %c0_10 = arith.constant 0 : index
    %10 = vector.load %arg5[%c0_9, %c0_10] : memref<1x256xf32, #tpu.memory_space<vmem>>, vector<1x256xf32>
    %11 = vector.broadcast %10 : vector<1x256xf32> to vector<8x256xf32>
    %12 = arith.addf %9, %11 : vector<8x256xf32>
    %cst_11 = arith.constant 0.000000e+00 : f32
    %13 = vector.broadcast %cst_11 : f32 to vector<8x256xf32>
    %14 = arith.maximumf %12, %13 : vector<8x256xf32>
    %c0_12 = arith.constant 0 : index
    %c0_13 = arith.constant 0 : index
    %15 = vector.load %arg6[%c0_12, %c0_13] : memref<256x128xf32, #tpu.memory_space<vmem>>, vector<256x128xf32>
    %cst_14 = arith.constant dense<0.000000e+00> : vector<8x128xf32>
    %16 = tpu.matmul %14, %15, %cst_14 {dimension_numbers = #tpu.dot_dimension_numbers<[1], [0], [0], [1], [0, 0, 1, 1], [], []>} : vector<8x256xf32>, vector<256x128xf32>, vector<8x128xf32> -> vector<8x128xf32>
    %c0_15 = arith.constant 0 : index
    %c0_16 = arith.constant 0 : index
    %17 = vector.load %arg7[%c0_15, %c0_16] : memref<1x128xf32, #tpu.memory_space<vmem>>, vector<1x128xf32>
    %18 = vector.broadcast %17 : vector<1x128xf32> to vector<8x128xf32>
    %19 = arith.addf %16, %18 : vector<8x128xf32>
    %cst_17 = arith.constant dense<0xFF800000> : vector<8xf32>
    %20 = vector.multi_reduction <maximumf>, %19, %cst_17 [1] : vector<8x128xf32> to vector<8xf32>
    %21 = vector.shape_cast %20 : vector<8xf32> to vector<8x1xf32>
    %22 = vector.broadcast %21 : vector<8x1xf32> to vector<8x128xf32>
    %23 = arith.subf %19, %22 : vector<8x128xf32>
    %24 = math.exp %23 : vector<8x128xf32>
    %cst_18 = arith.constant dense<0.000000e+00> : vector<8xf32>
    %25 = vector.multi_reduction <add>, %24, %cst_18 [1] : vector<8x128xf32> to vector<8xf32>
    %26 = vector.shape_cast %25 : vector<8xf32> to vector<8x1xf32>
    %27 = tpu.reciprocal %26 {approx = true} : vector<8x1xf32> -> vector<8x1xf32>
    %28 = vector.broadcast %27 : vector<8x1xf32> to vector<8x128xf32>
    %29 = arith.mulf %24, %28 : vector<8x128xf32>
    %c0_19 = arith.constant 0 : index
    %c0_20 = arith.constant 0 : index
    %30 = vector.load %arg8[%c0_19, %c0_20] : memref<8x128xf32, #tpu.memory_space<vmem>>, vector<8x128xf32>
    tpu.vector_store %arg8[%c0_19, %c0_20], %29 {strides = array<i32>} : memref<8x128xf32, #tpu.memory_space<vmem>>, vector<8x128xf32>,
    return
  }
  func.func @transform_0(%arg0: i32) -> (i32, i32) {
    %c0_i32 = arith.constant 0 : i32
    %c0_i32_0 = arith.constant 0 : i32
    return %arg0, %c0_i32 : i32, i32
  }
  func.func @transform_1(%arg0: i32) -> (i32, i32) {
    %c0_i32 = arith.constant 0 : i32
    %c0_i32_0 = arith.constant 0 : i32
    %c0_i32_1 = arith.constant 0 : i32
    return %c0_i32, %c0_i32_0 : i32, i32
  }
  func.func @transform_2(%arg0: i32) -> (i32, i32) {
    %c0_i32 = arith.constant 0 : i32
    %c0_i32_0 = arith.constant 0 : i32
    %c0_i32_1 = arith.constant 0 : i32
    return %c0_i32, %c0_i32_0 : i32, i32
  }
  func.func @transform_3(%arg0: i32) -> (i32, i32) {
    %c0_i32 = arith.constant 0 : i32
    %c0_i32_0 = arith.constant 0 : i32
    %c0_i32_1 = arith.constant 0 : i32
    return %c0_i32, %c0_i32_0 : i32, i32
  }
  func.func @transform_4(%arg0: i32) -> (i32, i32) {
    %c0_i32 = arith.constant 0 : i32
    %c0_i32_0 = arith.constant 0 : i32
    %c0_i32_1 = arith.constant 0 : i32
    return %c0_i32, %c0_i32_0 : i32, i32
  }
  func.func @transform_5(%arg0: i32) -> (i32, i32) {
    %c0_i32 = arith.constant 0 : i32
    %c0_i32_0 = arith.constant 0 : i32
    %c0_i32_1 = arith.constant 0 : i32
    return %c0_i32, %c0_i32_0 : i32, i32
  }
  func.func @transform_6(%arg0: i32) -> (i32, i32) {
    %c0_i32 = arith.constant 0 : i32
    %c0_i32_0 = arith.constant 0 : i32
    %c0_i32_1 = arith.constant 0 : i32
    return %c0_i32, %c0_i32_0 : i32, i32
  }
  func.func @transform_7(%arg0: i32) -> (i32, i32) {
    %c0_i32 = arith.constant 0 : i32
    %c0_i32_0 = arith.constant 0 : i32
    return %arg0, %c0_i32 : i32, i32
  }
}

</mosaic_0001>

<bundles_post_ra>
// kernel: _dense_mlp_impl.1
= control target key start
LH: loop header
LB: loop body
LE: loop exit
PB: predicated region body
PF: predicated region fallthrough
CT: control target
= control target key end

     0   :  { %12 = vsyncpa [#allocation3], 0  ;;  %s729_s0 = inlined_call_operand.hbm [shape: f32[8,32], index: 0, kind: input, shape index: {}]   ;;  %s730_s1 = inlined_call_operand.hbm [shape: f32[32,256], index: 1, kind: input, shape index: {}]   ;;  %s731_s2 = inlined_call_operand.hbm [shape: f32[1,256], index: 2, kind: input, shape index: {}]   ;;  %s732_s3 = inlined_call_operand.hbm [shape: f32[256,256], index: 3, kind: input, shape index: {}]   ;;  %s733_s4 = inlined_call_operand.vmem [shape: f32[1,256], index: 4, kind: input, shape index: {}]   ;;  %s734_s5 = inlined_call_operand.hbm [shape: f32[256,128], index: 5, kind: input, shape index: {}]   ;;  %s735_s6 = inlined_call_operand.vmem [shape: f32[1,128], index: 6, kind: input, shape index: {}]   ;;  %s736_s7 = inlined_call_operand.hbm [shape: f32[8,128], index: 7, kind: output, shape index: {}]  }
   0x1   :  { %13 = vsyncpa [#allocation6], 0 }
   0x2   :  { %14 = vsyncpa [#allocation9], 0 }
   0x3   :  { %15 = vsyncpa [#allocation4], 0  ;;  %s654_s24 = smov [#allocation5]  }
   0x4   :  { %s31_s25 = sshll.u32 %s654_s24, 4  ;;  %s32_s25 = int_to_ptr.vmem [resolvable:$true] %s31_s25 }
   0x5   :  { %s534_s26 = scalar_lea.vmem %s32_s25, 1024  ;;  %p539_p1 = scmp.lt.s32.totalorder %s32_s25, %s32_s25 }
   0x6   :  { %p535_p0 = scmp.ne.s32.totalorder %s32_s25, %s534_s26  ;;  %p540_p2 = scmp.lt.s32.totalorder %s534_s26, %s534_s26 }
   0x8   :  { %p541_p3 = por %p540_p2, %p539_p1 }
   0xa   :  { %p542_p4 = pnand %p541_p3, %p535_p0 }
   0xc   :  { %545 = shalt.err (!%p542_p4)
}
   0xd   :  { %s655_s27 = smov 256   ;;  %s656_s28 = smov 16  }
   0xe   :  { %37 = dma.hbm_to_vmem [thread:$0]  %s730_s1, 1024, %s32_s25, [#allocation6], %s655_s27, %s655_s27, %s656_s28  }
   0xf   :  { %s657_s8 = smov [#allocation8]   ;;  %s658_s10 = smov [#allocation2]  }
  0x10   :  { %s53_s9 = sshll.u32 %s657_s8, 4  ;;  %s22_s11 = sshll.u32 %s658_s10, 4  ;;  %s54_s9 = int_to_ptr.vmem [resolvable:$true] %s53_s9  ;;  %s23_s11 = int_to_ptr.vmem [resolvable:$true] %s22_s11 }
  0x11   :  { %s554_s12 = scalar_lea.vmem %s54_s9, 8192  ;;  %p559_p6 = scmp.lt.s32.totalorder %s54_s9, %s54_s9 }
  0x12   :  { %p555_p5 = scmp.ne.s32.totalorder %s54_s9, %s554_s12  ;;  %p560_p7 = scmp.lt.s32.totalorder %s554_s12, %s554_s12 }
  0x14   :  { %p561_p8 = por %p560_p7, %p559_p6 }
  0x16   :  { %p562_p9 = pnand %p561_p8, %p555_p5 }
  0x18   :  { %565 = shalt.err (!%p562_p9)
}
  0x19   :  { %59 = dma.hbm_to_vmem [thread:$0]  %s732_s3, 8192, %s54_s9, [#allocation9], %s655_s27, %s655_s27, %s656_s28  }
  0x1a   :  { %s574_s15 = scalar_lea.vmem %s23_s11, 128  ;;  %p579_p11 = scmp.lt.s32.totalorder %s23_s11, %s23_s11 }
  0x1b   :  { %p575_p10 = scmp.ne.s32.totalorder %s23_s11, %s574_s15  ;;  %p580_p12 = scmp.lt.s32.totalorder %s574_s15, %s574_s15 }
  0x1d   :  { %p581_p13 = por %p580_p12, %p579_p11 }
  0x1f   :  { %p582_p0 = pnand %p581_p13, %p575_p10 }
  0x21   :  { %585 = shalt.err (!%p582_p0)
}
  0x22   :  { %25 = dma.hbm_to_vmem [thread:$0]  %s729_s0, 128, %s23_s11, [#allocation3]  }
  0x23   :  { %s659_s17 = smov [#allocation7]   ;;  %s660_s19 = smov [#allocation10]  }
  0x24   :  { %s44_s18 = sshll.u32 %s659_s17, 4  ;;  %s67_s20 = sshll.u32 %s660_s19, 4  ;;  %s45_s18 = int_to_ptr.vmem [resolvable:$true] %s44_s18  ;;  %s68_s20 = int_to_ptr.vmem [resolvable:$true] %s67_s20 }
  0x25   :  { %s594_s21 = scalar_lea.vmem %s45_s18, 32  ;;  %p599_p2 = scmp.lt.s32.totalorder %s45_s18, %s45_s18 }
  0x26   :  { %p595_p1 = scmp.ne.s32.totalorder %s45_s18, %s594_s21  ;;  %p600_p3 = scmp.lt.s32.totalorder %s594_s21, %s594_s21 }
  0x28   :  { %p601_p4 = por %p600_p3, %p599_p2 }
  0x2a   :  { %p602_p5 = pnand %p601_p4, %p595_p1 }
  0x2c   :  { %605 = shalt.err (!%p602_p5)
}
  0x2d   :  { %47 = dma.hbm_to_vmem [thread:$0]  %s731_s2, 32, %s45_s18, [#allocation6]  }
  0x2e   :  { %s614_s23 = scalar_lea.vmem %s68_s20, 4096  ;;  %p619_p7 = scmp.lt.s32.totalorder %s68_s20, %s68_s20 }
  0x2f   :  { %p615_p6 = scmp.ne.s32.totalorder %s68_s20, %s614_s23  ;;  %p620_p8 = scmp.lt.s32.totalorder %s614_s23, %s614_s23 }
  0x31   :  { %p621_p9 = por %p620_p8, %p619_p7 }
  0x33   :  { %p622_p10 = pnand %p621_p9, %p615_p6 }
  0x35   :  { %625 = shalt.err (!%p622_p10)
}
  0x36   :  { %s661_s0 = smov 128   ;;  %s662_s24 = smov 8  }
  0x37   :  { %73 = dma.hbm_to_vmem [thread:$0]  %s734_s5, 4096, %s68_s20, [#allocation9], %s661_s0, %s661_s0, %s662_s24  }
  0x38   :  { %646 = dma.done.wait [#allocation3], 128  }
  0x39   :  { %647 = vsyncadd [#allocation3], 4294967168 }
  0x3a   :  { %648 = dma.done.wait [#allocation6], 1056  }
  0x3b   :  { %649 = vsyncadd [#allocation6], 4294966240 }
  0x3c   :  { %650 = dma.done.wait [#allocation9], 12288  }
  0x3d   :  { %651 = vsyncadd [#allocation9], 4294955008  ;;  %v663_v0 = vmov 0.0   ;;  %v99_v1 = vld [vmem:[#allocation5 + $0x38] sm:$0xff]  ;;  %v98_v2 = vld [vmem:[#allocation5 + $0x30] sm:$0xff]  ;;  %vm112_vm0 = vcmask 261120  }
  0x3e   :  { %180 = vmatprep.mubr.f32.mxu0 %v663_v0  ;;  %v97_v3 = vld [vmem:[#allocation5 + $0x28] sm:$0xff]  ;;  %140 = vmatprep.subr.mxu0 %v99_v1  ;;  %v96_v4 = vld [vmem:[#allocation5 + $0x20] sm:$0xff]  ;;  %v95_v5 = vld [vmem:[#allocation5 + $0x18] sm:$0xff] }
  0x3f   :  { %141 = vmatpush1.msra.mxu0 %v98_v2  ;;  %v94_v6 = vld [vmem:[#allocation5 + $0x10] sm:$0xff]  ;;  %v220_v7 = vld [vmem:[#allocation8 + $0xf8] sm:$0xff]  ;;  %v93_v10 = vld [vmem:[#allocation5 + $0x8] sm:$0xff] }
  0x40   :  { %142 = vmatprep.subr.mxu0 %v97_v3  ;;  %v219_v8 = vld [vmem:[#allocation8 + $0xf0] sm:$0xff]  ;;  %v218_v9 = vld [vmem:[#allocation8 + $0xe8] sm:$0xff]  ;;  %265 = vmatprep.subr.mxu1 %v220_v7  ;;  %v217_v11 = vld [vmem:[#allocation8 + $0xe0] sm:$0xff] }
  0x41   :  { %143 = vmatpush1.msra.mxu0 %v96_v4  ;;  %v92_v12 = vld [vmem:[#allocation5] sm:$0xff]  ;;  %266 = vmatpush1.msra.mxu1 %v219_v8  ;;  %v91_v14 = vld [vmem:[#allocation2] sm:$0xff]  ;;  %v214_v16 = vld [vmem:[#allocation8 + $0xc8] sm:$0xff] }
  0x42   :  { %144 = vmatprep.subr.mxu0 %v95_v5  ;;  %v216_v13 = vld [vmem:[#allocation8 + $0xd8] sm:$0xff]  ;;  %267 = vmatprep.subr.mxu1 %v218_v9  ;;  %v215_v15 = vld [vmem:[#allocation8 + $0xd0] sm:$0xff]  ;;  %v213_v17 = vld [vmem:[#allocation8 + $0xc0] sm:$0xff] }
  0x43   :  { %145 = vmatpush1.msra.mxu0 %v94_v6  ;;  %268 = vmatpush1.msra.mxu1 %v217_v11  ;;  %v212_v18 = vld [vmem:[#allocation8 + $0xb8] sm:$0xff]  ;;  %v211_v19 = vld [vmem:[#allocation8 + $0xb0] sm:$0xff]  ;;  %v210_v20 = vld [vmem:[#allocation8 + $0xa8] sm:$0xff] }
  0x44   :  { %146 = vmatprep.subr.mxu0 %v93_v10  ;;  %269 = vmatprep.subr.mxu1 %v216_v13  ;;  %v209_v21 = vld [vmem:[#allocation8 + $0xa0] sm:$0xff]  ;;  %v208_v22 = vld [vmem:[#allocation8 + $0x98] sm:$0xff]  ;;  %v207_v23 = vld [vmem:[#allocation8 + $0x90] sm:$0xff] }
  0x45   :  { %147 = vmatpush1.msra.mxu0 %v92_v12  ;;  %270 = vmatpush1.msra.mxu1 %v215_v15  ;;  %v206_v24 = vld [vmem:[#allocation8 + $0x88] sm:$0xff]  ;;  %v205_v25 = vld [vmem:[#allocation8 + $0x80] sm:$0xff]  ;;  %v204_v26 = vld [vmem:[#allocation8 + $0x78] sm:$0xff] }
  0x46   :  { %474 = vmatmul.mubr.msk.f32.vlgmr.msra.gmra.mxu0 %vm112_vm0, %v91_v14  ;;  %271 = vmatprep.subr.mxu1 %v214_v16  ;;  %v203_v27 = vld [vmem:[#allocation8 + $0x70] sm:$0xff]  ;;  %v202_v28 = vld [vmem:[#allocation8 + $0x68] sm:$0xff]  ;;  %v201_v29 = vld [vmem:[#allocation8 + $0x60] sm:$0xff] }
  0x47   :  { %272 = vmatpush1.msra.mxu1 %v213_v17  ;;  %v200_v30 = vld [vmem:[#allocation8 + $0x58] sm:$0xff]  ;;  %v199_v31 = vld [vmem:[#allocation8 + $0x50] sm:$0xff]  ;;  %v198_v32 = vld [vmem:[#allocation8 + $0x48] sm:$0xff] }
  0x48   :  { %273 = vmatprep.subr.mxu1 %v212_v18  ;;  %v197_v33 = vld [vmem:[#allocation8 + $0x40] sm:$0xff]  ;;  %v196_v34 = vld [vmem:[#allocation8 + $0x38] sm:$0xff]  ;;  %v195_v35 = vld [vmem:[#allocation8 + $0x30] sm:$0xff] }
  0x49   :  { %274 = vmatpush1.msra.mxu1 %v211_v19  ;;  %v194_v36 = vld [vmem:[#allocation8 + $0x28] sm:$0xff]  ;;  %v193_v37 = vld [vmem:[#allocation8 + $0x20] sm:$0xff]  ;;  %v192_v38 = vld [vmem:[#allocation8 + $0x18] sm:$0xff] }
  0x4a   :  { %275 = vmatprep.subr.mxu1 %v210_v20  ;;  %v191_v39 = vld [vmem:[#allocation8 + $0x10] sm:$0xff]  ;;  %v190_v40 = vld [vmem:[#allocation8 + $0x8] sm:$0xff]  ;;  %v189_v41 = vld [vmem:[#allocation8] sm:$0xff] }
  0x4b   :  { %276 = vmatpush1.msra.mxu1 %v209_v21  ;;  %v252_v42 = vld [vmem:[#allocation8 + $0x1f8] sm:$0xff]  ;;  %v251_v43 = vld [vmem:[#allocation8 + $0x1f0] sm:$0xff]  ;;  %v250_v44 = vld [vmem:[#allocation8 + $0x1e8] sm:$0xff] }
  0x4c   :  { %277 = vmatprep.subr.mxu1 %v208_v22  ;;  %v249_v45 = vld [vmem:[#allocation8 + $0x1e0] sm:$0xff]  ;;  %v248_v46 = vld [vmem:[#allocation8 + $0x1d8] sm:$0xff]  ;;  %v247_v47 = vld [vmem:[#allocation8 + $0x1d0] sm:$0xff] }
  0x4d   :  { %278 = vmatpush1.msra.mxu1 %v207_v23  ;;  %v246_v48 = vld [vmem:[#allocation8 + $0x1c8] sm:$0xff]  ;;  %v245_v49 = vld [vmem:[#allocation8 + $0x1c0] sm:$0xff]  ;;  %v244_v50 = vld [vmem:[#allocation8 + $0x1b8] sm:$0xff] }
  0x4e   :  { %279 = vmatprep.subr.mxu1 %v206_v24  ;;  %v243_v51 = vld [vmem:[#allocation8 + $0x1b0] sm:$0xff]  ;;  %v242_v52 = vld [vmem:[#allocation8 + $0x1a8] sm:$0xff]  ;;  %v241_v53 = vld [vmem:[#allocation8 + $0x1a0] sm:$0xff] }
  0x4f   :  { %280 = vmatpush1.msra.mxu1 %v205_v25  ;;  %v240_v54 = vld [vmem:[#allocation8 + $0x198] sm:$0xff]  ;;  %v239_v55 = vld [vmem:[#allocation8 + $0x190] sm:$0xff]  ;;  %v238_v56 = vld [vmem:[#allocation8 + $0x188] sm:$0xff] }
  0x50   :  { %281 = vmatprep.subr.mxu1 %v204_v26  ;;  %v237_v57 = vld [vmem:[#allocation8 + $0x180] sm:$0xff]  ;;  %v236_v58 = vld [vmem:[#allocation8 + $0x178] sm:$0xff]  ;;  %v235_v59 = vld [vmem:[#allocation8 + $0x170] sm:$0xff] }
  0x51   :  { %282 = vmatpush1.msra.mxu1 %v203_v27  ;;  %v234_v60 = vld [vmem:[#allocation8 + $0x168] sm:$0xff]  ;;  %v233_v61 = vld [vmem:[#allocation8 + $0x160] sm:$0xff]  ;;  %v232_v62 = vld [vmem:[#allocation8 + $0x158] sm:$0xff] }
  0x52   :  { %283 = vmatprep.subr.mxu1 %v202_v28  ;;  %v231_v63 = vld [vmem:[#allocation8 + $0x150] sm:$0xff]  ;;  %v230_v0 = vld [vmem:[#allocation8 + $0x148] sm:$0xff]  ;;  %v229_v1 = vld [vmem:[#allocation8 + $0x140] sm:$0xff] }
  0x53   :  { %284 = vmatpush1.msra.mxu1 %v201_v29  ;;  %v228_v2 = vld [vmem:[#allocation8 + $0x138] sm:$0xff]  ;;  %v227_v3 = vld [vmem:[#allocation8 + $0x130] sm:$0xff]  ;;  %v226_v4 = vld [vmem:[#allocation8 + $0x128] sm:$0xff] }
  0x54   :  { %285 = vmatprep.subr.mxu1 %v200_v30  ;;  %v225_v5 = vld [vmem:[#allocation8 + $0x120] sm:$0xff]  ;;  %v224_v6 = vld [vmem:[#allocation8 + $0x118] sm:$0xff]  ;;  %v223_v7 = vld [vmem:[#allocation8 + $0x110] sm:$0xff] }
  0x55   :  { %286 = vmatpush1.msra.mxu1 %v199_v31  ;;  %v222_v8 = vld [vmem:[#allocation8 + $0x108] sm:$0xff]  ;;  %v221_v9 = vld [vmem:[#allocation8 + $0x100] sm:$0xff]  ;;  %v369_v10 = vld [vmem:[#allocation10 + $0xf8] sm:$0xff] }
  0x56   :  { %287 = vmatprep.subr.mxu1 %v198_v32  ;;  %v353_v11 = vld [vmem:[#allocation10 + $0x78] sm:$0xff]  ;;  %v368_v12 = vld [vmem:[#allocation10 + $0xf0] sm:$0xff]  ;;  %476 = vmatprep.subr.mxu0 %v369_v10  ;;  %v367_v14 = vld [vmem:[#allocation10 + $0xe8] sm:$0xff] }
  0x57   :  { %288 = vmatpush1.msra.mxu1 %v197_v33  ;;  %v352_v13 = vld [vmem:[#allocation10 + $0x70] sm:$0xff]  ;;  %477 = vmatpush3.msra.mxu0 %v353_v11  ;;  %v351_v15 = vld [vmem:[#allocation10 + $0x68] sm:$0xff]  ;;  %v366_v16 = vld [vmem:[#allocation10 + $0xe0] sm:$0xff] }
  0x58   :  { %289 = vmatprep.subr.mxu1 %v196_v34  ;;  %478 = vmatprep.subr.mxu0 %v368_v12  ;;  %v350_v17 = vld [vmem:[#allocation10 + $0x60] sm:$0xff]  ;;  %v365_v18 = vld [vmem:[#allocation10 + $0xd8] sm:$0xff]  ;;  %v364_v20 = vld [vmem:[#allocation10 + $0xd0] sm:$0xff]  ;;  %v102_v34 = vlaneseq }
  0x59   :  { %290 = vmatpush1.msra.mxu1 %v195_v35  ;;  %479 = vmatpush3.msra.mxu0 %v352_v13  ;;  %v349_v19 = vld [vmem:[#allocation10 + $0x58] sm:$0xff]  ;;  %v348_v21 = vld [vmem:[#allocation10 + $0x50] sm:$0xff]  ;;  %v363_v22 = vld [vmem:[#allocation10 + $0xc8] sm:$0xff] }
  0x5a   :  { %291 = vmatprep.subr.mxu1 %v194_v36  ;;  %480 = vmatprep.subr.mxu0 %v367_v14  ;;  %v347_v23 = vld [vmem:[#allocation10 + $0x48] sm:$0xff]  ;;  %v362_v24 = vld [vmem:[#allocation10 + $0xc0] sm:$0xff]  ;;  %v361_v26 = vld [vmem:[#allocation10 + $0xb8] sm:$0xff]  ;;  %v103_v35 = vshrl.u32 %v102_v34, 7 }
  0x5b   :  { %292 = vmatpush1.msra.mxu1 %v193_v37  ;;  %481 = vmatpush3.msra.mxu0 %v351_v15  ;;  %v346_v25 = vld [vmem:[#allocation10 + $0x40] sm:$0xff]  ;;  %v345_v27 = vld [vmem:[#allocation10 + $0x38] sm:$0xff]  ;;  %v360_v28 = vld [vmem:[#allocation10 + $0xb0] sm:$0xff] }
  0x5c   :  { %293 = vmatprep.subr.mxu1 %v192_v38  ;;  %482 = vmatprep.subr.mxu0 %v366_v16  ;;  %v344_v29 = vld [vmem:[#allocation10 + $0x30] sm:$0xff]  ;;  %v359_v30 = vld [vmem:[#allocation10 + $0xa8] sm:$0xff]  ;;  %v358_v32 = vld [vmem:[#allocation10 + $0xa0] sm:$0xff]  ;;  %v104_v36 = vsub.s32 0, %v103_v35  ;;  %v108_v38 = vsub.s32 1, %v103_v35 }
  0x5d   :  { %294 = vmatpush1.msra.mxu1 %v191_v39  ;;  %483 = vmatpush3.msra.mxu0 %v350_v17  ;;  %v343_v31 = vld [vmem:[#allocation10 + $0x28] sm:$0xff]  ;;  %v342_v33 = vld [vmem:[#allocation10 + $0x20] sm:$0xff]  ;;  %v100_v37 = vld [vmem:[#allocation7] sm:$0x3] }
  0x5e   :  { %295 = vmatprep.subr.mxu1 %v190_v40  ;;  %484 = vmatprep.subr.mxu0 %v365_v18  ;;  %v105_v39 = vrot.slane %v100_v37, %v104_v36  ;;  %v109_v40 = vrot.slane %v100_v37, %v108_v38 }
  0x5f   :  { %296 = vmatpush1.msra.mxu1 %v189_v41  ;;  %485 = vmatpush3.msra.mxu0 %v349_v19 }
  0x60   :  { %297 = vmatprep.subr.mxu1 %v252_v42  ;;  %486 = vmatprep.subr.mxu0 %v364_v20 }
  0x61   :  { %298 = vmatpush2.msra.mxu1 %v251_v43  ;;  %487 = vmatpush3.msra.mxu0 %v348_v21 }
  0x62   :  { %299 = vmatprep.subr.mxu1 %v250_v44  ;;  %488 = vmatprep.subr.mxu0 %v363_v22 }
  0x63   :  { %300 = vmatpush2.msra.mxu1 %v249_v45  ;;  %489 = vmatpush3.msra.mxu0 %v347_v23 }
  0x64   :  { %301 = vmatprep.subr.mxu1 %v248_v46  ;;  %490 = vmatprep.subr.mxu0 %v362_v24 }
  0x65   :  { %302 = vmatpush2.msra.mxu1 %v247_v47  ;;  %491 = vmatpush3.msra.mxu0 %v346_v25  ;;  %v357_v47 = vld [vmem:[#allocation10 + $0x98] sm:$0xff] }
  0x66   :  { %303 = vmatprep.subr.mxu1 %v246_v48  ;;  %492 = vmatprep.subr.mxu0 %v361_v26  ;;  %v341_v48 = vld [vmem:[#allocation10 + $0x18] sm:$0xff] }
  0x67   :  { %304 = vmatpush2.msra.mxu1 %v245_v49  ;;  %493 = vmatpush3.msra.mxu0 %v345_v27  ;;  %v356_v49 = vld [vmem:[#allocation10 + $0x90] sm:$0xff] }
  0x68   :  { %305 = vmatprep.subr.mxu1 %v244_v50  ;;  %494 = vmatprep.subr.mxu0 %v360_v28  ;;  %v340_v50 = vld [vmem:[#allocation10 + $0x10] sm:$0xff] }
  0x69   :  { %306 = vmatpush2.msra.mxu1 %v243_v51  ;;  %495 = vmatpush3.msra.mxu0 %v344_v29  ;;  %v355_v51 = vld [vmem:[#allocation10 + $0x88] sm:$0xff] }
  0x6a   :  { %307 = vmatprep.subr.mxu1 %v242_v52  ;;  %496 = vmatprep.subr.mxu0 %v359_v30  ;;  %v339_v52 = vld [vmem:[#allocation10 + $0x8] sm:$0xff] }
  0x6b   :  { %308 = vmatpush2.msra.mxu1 %v241_v53  ;;  %497 = vmatpush3.msra.mxu0 %v343_v31  ;;  %v354_v53 = vld [vmem:[#allocation10 + $0x80] sm:$0xff] }
  0x6c   :  { %309 = vmatprep.subr.mxu1 %v240_v54  ;;  %498 = vmatprep.subr.mxu0 %v358_v32  ;;  %v338_v54 = vld [vmem:[#allocation10] sm:$0xff] }
  0x6d   :  { %310 = vmatpush2.msra.mxu1 %v239_v55  ;;  %499 = vmatpush3.msra.mxu0 %v342_v33  ;;  %v253_v55 = vld [vmem:[%s733_s4] sm:$0x3]  ;;  %s664_s4 = smov [#allocation11]  }
  0x6e   :  { %311 = vmatprep.subr.mxu1 %v238_v56  ;;  %500 = vmatprep.subr.mxu0 %v357_v47  ;;  %v258_v56 = vrot.slane %v253_v55, %v104_v36  ;;  %s463_s29 = sshll.u32 %s664_s4, 4  ;;  %s464_s29 = int_to_ptr.vmem [resolvable:$true] %s463_s29 }
  0x6f   :  { %312 = vmatpush2.msra.mxu1 %v237_v57  ;;  %501 = vmatpush3.msra.mxu0 %v341_v48  ;;  %v262_v57 = vrot.slane %v253_v55, %v108_v38  ;;  %s626_s30 = scalar_lea.vmem %s464_s29, 128  ;;  %p631_p12 = scmp.lt.s32.totalorder %s464_s29, %s464_s29 }
  0x70   :  { %313 = vmatprep.subr.mxu1 %v236_v58  ;;  %502 = vmatprep.subr.mxu0 %v356_v49  ;;  %p627_p11 = scmp.ne.s32.totalorder %s464_s29, %s626_s30  ;;  %p632_p13 = scmp.lt.s32.totalorder %s626_s30, %s626_s30 }
  0x71   :  { %314 = vmatpush2.msra.mxu1 %v235_v59  ;;  %503 = vmatpush3.msra.mxu0 %v340_v50 }
  0x72   :  { %315 = vmatprep.subr.mxu1 %v234_v60  ;;  %504 = vmatprep.subr.mxu0 %v355_v51  ;;  %p633_p0 = por %p632_p13, %p631_p12 }
  0x73   :  { %316 = vmatpush2.msra.mxu1 %v233_v61  ;;  %505 = vmatpush3.msra.mxu0 %v339_v52 }
  0x74   :  { %317 = vmatprep.subr.mxu1 %v232_v62  ;;  %506 = vmatprep.subr.mxu0 %v354_v53  ;;  %p634_p1 = pnand %p633_p0, %p627_p11 }
  0x75   :  { %318 = vmatpush2.msra.mxu1 %v231_v63  ;;  %507 = vmatpush3.msra.mxu0 %v338_v54 }
  0x76   :  { %319 = vmatprep.subr.mxu1 %v230_v0 }
  0x77   :  { %320 = vmatpush2.msra.mxu1 %v229_v1 }
  0x78   :  { %321 = vmatprep.subr.mxu1 %v228_v2  ;;  %v475_v2 = vld [vmem:[%s735_s6] ss:$0 sm:$0xff] }
  0x79   :  { %322 = vmatpush2.msra.mxu1 %v227_v3 }
  0x7a   :  { %323 = vmatprep.subr.mxu1 %v226_v4 }
  0x7b   :  { %324 = vmatpush2.msra.mxu1 %v225_v5 }
  0x7c   :  { %325 = vmatprep.subr.mxu1 %v224_v6 }
  0x7d   :  { %326 = vmatpush2.msra.mxu1 %v223_v7 }
  0x7e   :  { %327 = vmatprep.subr.mxu1 %v222_v8 }
  0x7f   :  { %328 = vmatpush2.msra.mxu1 %v221_v9 }
 0x106   :  { %v182_v41 = vpop.f32.mrf.mxu0 }
 0x107   :  { %v183_v42 = vadd.f32 %v182_v41, %v105_v39 }
 0x108   :  { %v184_v43 = vpop.f32.mrf.mxu0 }
 0x109   :  { %v185_v44 = vadd.f32 %v184_v43, %v109_v40  ;;  %v187_v46 = vmax.f32 %v183_v42, 0.0 }
 0x10b   :  { %v188_v45 = vmax.f32 %v185_v44, 0.0 }
 0x10d   :  { %329 = vmatprep.mubr.f32.mxu1 %v188_v45 }
 0x10e   :  { %330 = vmatmul.mubr.f32.vlgmr.msra.gmra.mxu1 %v187_v46 }
 0x1ce   :  { %v331_v58 = vpop.f32.mrf.mxu1 }
 0x1cf   :  { %v332_v59 = vadd.f32 %v331_v58, %v258_v56 }
 0x1d0   :  { %v333_v60 = vpop.f32.mrf.mxu1 }
 0x1d1   :  { %v334_v61 = vadd.f32 %v333_v60, %v262_v57  ;;  %v336_v63 = vmax.f32 %v332_v59, 0.0 }
 0x1d3   :  { %v337_v62 = vmax.f32 %v334_v61, 0.0 }
 0x1d5   :  { %441 = vmatprep.mubr.f32.mxu0 %v337_v62 }
 0x1d6   :  { %442 = vmatmul.mubr.f32.vlgmr.msra.gmra.mxu0 %v336_v63 }
 0x296   :  { %v508_v0 = vpop.f32.mrf.mxu0 }
 0x298   :  { %v509_v1 = vpop.f32.mrf.mxu0 }
 0x299   :  { %v510_v3 = vadd.f32 %v509_v1, %v508_v0 }
 0x29b   :  { %v444_v4 = vadd.f32 %v510_v3, %v475_v2 }
 0x29d   :  { %447 = vmax.xlane.f32.xlu0 %v444_v4 }
 0x326   :  { %v448_v5 = vpop.xlane.xlu0 %447 }
 0x327   :  { %v449_v6 = vsub.f32 %v444_v4, %v448_v5 }
 0x329   :  { %v450_v7 = vmul.f32 1.442695, %v449_v6 }
 0x32b   :  { %522 = vpow2.f32 %v450_v7 }
 0x338   :  { %v523_v8 = vpop.eup %522 }
 0x339   :  { %452 = vadd.xlane.f32.xlu0 %v523_v8 }
 0x3c2   :  { %v453_v9 = vpop.xlane.xlu0 %452 }
 0x3c3   :  { %524 = vrcp.f32 %v453_v9 }
 0x3d0   :  { %v525_v10 = vpop.eup %524 }
 0x3d1   :  { %v455_v11 = vmul.f32 %v525_v10, %v523_v8 }
 0x3d3   :  { %456 = vst [vmem:[#allocation11] sm:$0xff] %v455_v11 }
 0x3d4   :  { %637 = shalt.err (!%p634_p1)
}
 0x3d5   :  { %466 = dma.vmem_to_hbm [thread:$0]  %s464_s29, 128, %s736_s7, [#allocation4]  }
 0x3d6   :  { %652 = dma.done.wait [#allocation4], 128  }
 0x3d7   :  { %653 = vsyncadd [#allocation4], 4294967168 }
 0x3d8   :  { %470 = vsyncpa [#allocation3], 1 }
 0x3d9   :  { %471 = vsyncpa [#allocation6], 1 }
 0x3da   :  { %472 = vsyncpa [#allocation9], 1 }
 0x3db   :  { %473 = vsyncpa [#allocation4], 1 }

// kernel: _dense_mlp_impl.1
= control target key start
LH: loop header
LB: loop body
LE: loop exit
PB: predicated region body
PF: predicated region fallthrough
CT: control target
= control target key end

     0   :  { %12 = vsyncpa [#allocation3], 0  ;;  %s729_s0 = inlined_call_operand.hbm [shape: f32[8,32], index: 0, kind: input, shape index: {}]   ;;  %s730_s1 = inlined_call_operand.hbm [shape: f32[32,256], index: 1, kind: input, shape index: {}]   ;;  %s731_s2 = inlined_call_operand.hbm [shape: f32[1,256], index: 2, kind: input, shape index: {}]   ;;  %s732_s3 = inlined_call_operand.hbm [shape: f32[256,256], index: 3, kind: input, shape index: {}]   ;;  %s733_s4 = inlined_call_operand.vmem [shape: f32[1,256], index: 4, kind: input, shape index: {}]   ;;  %s734_s5 = inlined_call_operand.hbm [shape: f32[256,128], index: 5, kind: input, shape index: {}]   ;;  %s735_s6 = inlined_call_operand.vmem [shape: f32[1,128], index: 6, kind: input, shape index: {}]   ;;  %s736_s7 = inlined_call_operand.hbm [shape: f32[8,128], index: 7, kind: output, shape index: {}]  }
   0x1   :  { %13 = vsyncpa [#allocation6], 0 }
   0x2   :  { %14 = vsyncpa [#allocation9], 0 }
   0x3   :  { %15 = vsyncpa [#allocation4], 0  ;;  %s654_s24 = smov [#allocation5]  }
   0x4   :  { %s31_s25 = sshll.u32 %s654_s24, 4  ;;  %s32_s25 = int_to_ptr.vmem [resolvable:$true] %s31_s25 }
   0x5   :  { %s534_s26 = scalar_lea.vmem %s32_s25, 1024  ;;  %p539_p1 = scmp.lt.s32.totalorder %s32_s25, %s32_s25 }
   0x6   :  { %p535_p0 = scmp.ne.s32.totalorder %s32_s25, %s534_s26  ;;  %p540_p2 = scmp.lt.s32.totalorder %s534_s26, %s534_s26 }
   0x8   :  { %p541_p3 = por %p540_p2, %p539_p1 }
   0xa   :  { %p542_p4 = pnand %p541_p3, %p535_p0 }
   0xc   :  { %545 = shalt.err (!%p542_p4)
}
   0xd   :  { %s655_s27 = smov 256   ;;  %s656_s28 = smov 16  }
   0xe   :  { %37 = dma.hbm_to_vmem [thread:$0]  %s730_s1, 1024, %s32_s25, [#allocation6], %s655_s27, %s655_s27, %s656_s28  }
   0xf   :  { %s657_s8 = smov [#allocation8]   ;;  %s658_s10 = smov [#allocation2]  }
  0x10   :  { %s53_s9 = sshll.u32 %s657_s8, 4  ;;  %s22_s11 = sshll.u32 %s658_s10, 4  ;;  %s54_s9 = int_to_ptr.vmem [resolvable:$true] %s53_s9  ;;  %s23_s11 = int_to_ptr.vmem [resolvable:$true] %s22_s11 }
  0x11   :  { %s554_s12 = scalar_lea.vmem %s54_s9, 8192  ;;  %p559_p6 = scmp.lt.s32.totalorder %s54_s9, %s54_s9 }
  0x12   :  { %p555_p5 = scmp.ne.s32.totalorder %s54_s9, %s554_s12  ;;  %p560_p7 = scmp.lt.s32.totalorder %s554_s12, %s554_s12 }
  0x14   :  { %p561_p8 = por %p560_p7, %p559_p6 }
  0x16   :  { %p562_p9 = pnand %p561_p8, %p555_p5 }
  0x18   :  { %565 = shalt.err (!%p562_p9)
}
  0x19   :  { %59 = dma.hbm_to_vmem [thread:$0]  %s732_s3, 8192, %s54_s9, [#allocation9], %s655_s27, %s655_s27, %s656_s28  }
  0x1a   :  { %s574_s15 = scalar_lea.vmem %s23_s11, 128  ;;  %p579_p11 = scmp.lt.s32.totalorder %s23_s11, %s23_s11 }
  0x1b   :  { %p575_p10 = scmp.ne.s32.totalorder %s23_s11, %s574_s15  ;;  %p580_p12 = scmp.lt.s32.totalorder %s574_s15, %s574_s15 }
  0x1d   :  { %p581_p13 = por %p580_p12, %p579_p11 }
  0x1f   :  { %p582_p0 = pnand %p581_p13, %p575_p10 }
  0x21   :  { %585 = shalt.err (!%p582_p0)
}
  0x22   :  { %25 = dma.hbm_to_vmem [thread:$0]  %s729_s0, 128, %s23_s11, [#allocation3]  }
  0x23   :  { %s659_s17 = smov [#allocation7]   ;;  %s660_s19 = smov [#allocation10]  }
  0x24   :  { %s44_s18 = sshll.u32 %s659_s17, 4  ;;  %s67_s20 = sshll.u32 %s660_s19, 4  ;;  %s45_s18 = int_to_ptr.vmem [resolvable:$true] %s44_s18  ;;  %s68_s20 = int_to_ptr.vmem [resolvable:$true] %s67_s20 }
  0x25   :  { %s594_s21 = scalar_lea.vmem %s45_s18, 32  ;;  %p599_p2 = scmp.lt.s32.totalorder %s45_s18, %s45_s18 }
  0x26   :  { %p595_p1 = scmp.ne.s32.totalorder %s45_s18, %s594_s21  ;;  %p600_p3 = scmp.lt.s32.totalorder %s594_s21, %s594_s21 }
  0x28   :  { %p601_p4 = por %p600_p3, %p599_p2 }
  0x2a   :  { %p602_p5 = pnand %p601_p4, %p595_p1 }
  0x2c   :  { %605 = shalt.err (!%p602_p5)
}
  0x2d   :  { %47 = dma.hbm_to_vmem [thread:$0]  %s731_s2, 32, %s45_s18, [#allocation6]  }
  0x2e   :  { %s614_s23 = scalar_lea.vmem %s68_s20, 4096  ;;  %p619_p7 = scmp.lt.s32.totalorder %s68_s20, %s68_s20 }
  0x2f   :  { %p615_p6 = scmp.ne.s32.totalorder %s68_s20, %s614_s23  ;;  %p620_p8 = scmp.lt.s32.totalorder %s614_s23, %s614_s23 }
  0x31   :  { %p621_p9 = por %p620_p8, %p619_p7 }
  0x33   :  { %p622_p10 = pnand %p621_p9, %p615_p6 }
  0x35   :  { %625 = shalt.err (!%p622_p10)
}
  0x36   :  { %s661_s0 = smov 128   ;;  %s662_s24 = smov 8  }
  0x37   :  { %73 = dma.hbm_to_vmem [thread:$0]  %s734_s5, 4096, %s68_s20, [#allocation9], %s661_s0, %s661_s0, %s662_s24  }
  0x38   :  { %646 = dma.done.wait [#allocation3], 128  }
  0x39   :  { %647 = vsyncadd [#allocation3], 4294967168 }
  0x3a   :  { %648 = dma.done.wait [#allocation6], 1056  }
  0x3b   :  { %649 = vsyncadd [#allocation6], 4294966240 }
  0x3c   :  { %650 = dma.done.wait [#allocation9], 12288  }
  0x3d   :  { %651 = vsyncadd [#allocation9], 4294955008  ;;  %v663_v0 = vmov 0.0   ;;  %v99_v1 = vld [vmem:[#allocation5 + $0x38] sm:$0xff]  ;;  %v98_v2 = vld [vmem:[#allocation5 + $0x30] sm:$0xff]  ;;  %vm112_vm0 = vcmask 261120  }
  0x3e   :  { %180 = vmatprep.mubr.f32.mxu0 %v663_v0  ;;  %v97_v3 = vld [vmem:[#allocation5 + $0x28] sm:$0xff]  ;;  %140 = vmatprep.subr.mxu0 %v99_v1  ;;  %v96_v4 = vld [vmem:[#allocation5 + $0x20] sm:$0xff]  ;;  %v95_v5 = vld [vmem:[#allocation5 + $0x18] sm:$0xff] }
  0x3f   :  { %141 = vmatpush1.msra.mxu0 %v98_v2  ;;  %v94_v6 = vld [vmem:[#allocation5 + $0x10] sm:$0xff]  ;;  %v220_v7 = vld [vmem:[#allocation8 + $0xf8] sm:$0xff]  ;;  %v93_v10 = vld [vmem:[#allocation5 + $0x8] sm:$0xff] }
  0x40   :  { %142 = vmatprep.subr.mxu0 %v97_v3  ;;  %v219_v8 = vld [vmem:[#allocation8 + $0xf0] sm:$0xff]  ;;  %v218_v9 = vld [vmem:[#allocation8 + $0xe8] sm:$0xff]  ;;  %265 = vmatprep.subr.mxu1 %v220_v7  ;;  %v217_v11 = vld [vmem:[#allocation8 + $0xe0] sm:$0xff] }
  0x41   :  { %143 = vmatpush1.msra.mxu0 %v96_v4  ;;  %v92_v12 = vld [vmem:[#allocation5] sm:$0xff]  ;;  %266 = vmatpush1.msra.mxu1 %v219_v8  ;;  %v91_v14 = vld [vmem:[#allocation2] sm:$0xff]  ;;  %v214_v16 = vld [vmem:[#allocation8 + $0xc8] sm:$0xff] }
  0x42   :  { %144 = vmatprep.subr.mxu0 %v95_v5  ;;  %v216_v13 = vld [vmem:[#allocation8 + $0xd8] sm:$0xff]  ;;  %267 = vmatprep.subr.mxu1 %v218_v9  ;;  %v215_v15 = vld [vmem:[#allocation8 + $0xd0] sm:$0xff]  ;;  %v213_v17 = vld [vmem:[#allocation8 + $0xc0] sm:$0xff] }
  0x43   :  { %145 = vmatpush1.msra.mxu0 %v94_v6  ;;  %268 = vmatpush1.msra.mxu1 %v217_v11  ;;  %v212_v18 = vld [vmem:[#allocation8 + $0xb8] sm:$0xff]  ;;  %v211_v19 = vld [vmem:[#allocation8 + $0xb0] sm:$0xff]  ;;  %v210_v20 = vld [vmem:[#allocation8 + $0xa8] sm:$0xff] }
  0x44   :  { %146 = vmatprep.subr.mxu0 %v93_v10  ;;  %269 = vmatprep.subr.mxu1 %v216_v13  ;;  %v209_v21 = vld [vmem:[#allocation8 + $0xa0] sm:$0xff]  ;;  %v208_v22 = vld [vmem:[#allocation8 + $0x98] sm:$0xff]  ;;  %v207_v23 = vld [vmem:[#allocation8 + $0x90] sm:$0xff] }
  0x45   :  { %147 = vmatpush1.msra.mxu0 %v92_v12  ;;  %270 = vmatpush1.msra.mxu1 %v215_v15  ;;  %v206_v24 = vld [vmem:[#allocation8 + $0x88] sm:$0xff]  ;;  %v205_v25 = vld [vmem:[#allocation8 + $0x80] sm:$0xff]  ;;  %v204_v26 = vld [vmem:[#allocation8 + $0x78] sm:$0xff] }
  0x46   :  { %474 = vmatmul.mubr.msk.f32.vlgmr.msra.gmra.mxu0 %vm112_vm0, %v91_v14  ;;  %271 = vmatprep.subr.mxu1 %v214_v16  ;;  %v203_v27 = vld [vmem:[#allocation8 + $0x70] sm:$0xff]  ;;  %v202_v28 = vld [vmem:[#allocation8 + $0x68] sm:$0xff]  ;;  %v201_v29 = vld [vmem:[#allocation8 + $0x60] sm:$0xff] }
  0x47   :  { %272 = vmatpush1.msra.mxu1 %v213_v17  ;;  %v200_v30 = vld [vmem:[#allocation8 + $0x58] sm:$0xff]  ;;  %v199_v31 = vld [vmem:[#allocation8 + $0x50] sm:$0xff]  ;;  %v198_v32 = vld [vmem:[#allocation8 + $0x48] sm:$0xff] }
  0x48   :  { %273 = vmatprep.subr.mxu1 %v212_v18  ;;  %v197_v33 = vld [vmem:[#allocation8 + $0x40] sm:$0xff]  ;;  %v196_v34 = vld [vmem:[#allocation8 + $0x38] sm:$0xff]  ;;  %v195_v35 = vld [vmem:[#allocation8 + $0x30] sm:$0xff] }
  0x49   :  { %274 = vmatpush1.msra.mxu1 %v211_v19  ;;  %v194_v36 = vld [vmem:[#allocation8 + $0x28] sm:$0xff]  ;;  %v193_v37 = vld [vmem:[#allocation8 + $0x20] sm:$0xff]  ;;  %v192_v38 = vld [vmem:[#allocation8 + $0x18] sm:$0xff] }
  0x4a   :  { %275 = vmatprep.subr.mxu1 %v210_v20  ;;  %v191_v39 = vld [vmem:[#allocation8 + $0x10] sm:$0xff]  ;;  %v190_v40 = vld [vmem:[#allocation8 + $0x8] sm:$0xff]  ;;  %v189_v41 = vld [vmem:[#allocation8] sm:$0xff] }
  0x4b   :  { %276 = vmatpush1.msra.mxu1 %v209_v21  ;;  %v252_v42 = vld [vmem:[#allocation8 + $0x1f8] sm:$0xff]  ;;  %v251_v43 = vld [vmem:[#allocation8 + $0x1f0] sm:$0xff]  ;;  %v250_v44 = vld [vmem:[#allocation8 + $0x1e8] sm:$0xff] }
  0x4c   :  { %277 = vmatprep.subr.mxu1 %v208_v22  ;;  %v249_v45 = vld [vmem:[#allocation8 + $0x1e0] sm:$0xff]  ;;  %v248_v46 = vld [vmem:[#allocation8 + $0x1d8] sm:$0xff]  ;;  %v247_v47 = vld [vmem:[#allocation8 + $0x1d0] sm:$0xff] }
  0x4d   :  { %278 = vmatpush1.msra.mxu1 %v207_v23  ;;  %v246_v48 = vld [vmem:[#allocation8 + $0x1c8] sm:$0xff]  ;;  %v245_v49 = vld [vmem:[#allocation8 + $0x1c0] sm:$0xff]  ;;  %v244_v50 = vld [vmem:[#allocation8 + $0x1b8] sm:$0xff] }
  0x4e   :  { %279 = vmatprep.subr.mxu1 %v206_v24  ;;  %v243_v51 = vld [vmem:[#allocation8 + $0x1b0] sm:$0xff]  ;;  %v242_v52 = vld [vmem:[#allocation8 + $0x1a8] sm:$0xff]  ;;  %v241_v53 = vld [vmem:[#allocation8 + $0x1a0] sm:$0xff] }
  0x4f   :  { %280 = vmatpush1.msra.mxu1 %v205_v25  ;;  %v240_v54 = vld [vmem:[#allocation8 + $0x198] sm:$0xff]  ;;  %v239_v55 = vld [vmem:[#allocation8 + $0x190] sm:$0xff]  ;;  %v238_v56 = vld [vmem:[#allocation8 + $0x188] sm:$0xff] }
  0x50   :  { %281 = vmatprep.subr.mxu1 %v204_v26  ;;  %v237_v57 = vld [vmem:[#allocation8 + $0x180] sm:$0xff]  ;;  %v236_v58 = vld [vmem:[#allocation8 + $0x178] sm:$0xff]  ;;  %v235_v59 = vld [vmem:[#allocation8 + $0x170] sm:$0xff] }
  0x51   :  { %282 = vmatpush1.msra.mxu1 %v203_v27  ;;  %v234_v60 = vld [vmem:[#allocation8 + $0x168] sm:$0xff]  ;;  %v233_v61 = vld [vmem:[#allocation8 + $0x160] sm:$0xff]  ;;  %v232_v62 = vld [vmem:[#allocation8 + $0x158] sm:$0xff] }
  0x52   :  { %283 = vmatprep.subr.mxu1 %v202_v28  ;;  %v231_v63 = vld [vmem:[#allocation8 + $0x150] sm:$0xff]  ;;  %v230_v0 = vld [vmem:[#allocation8 + $0x148] sm:$0xff]  ;;  %v229_v1 = vld [vmem:[#allocation8 + $0x140] sm:$0xff] }
  0x53   :  { %284 = vmatpush1.msra.mxu1 %v201_v29  ;;  %v228_v2 = vld [vmem:[#allocation8 + $0x138] sm:$0xff]  ;;  %v227_v3 = vld [vmem:[#allocation8 + $0x130] sm:$0xff]  ;;  %v226_v4 = vld [vmem:[#allocation8 + $0x128] sm:$0xff] }
  0x54   :  { %285 = vmatprep.subr.mxu1 %v200_v30  ;;  %v225_v5 = vld [vmem:[#allocation8 + $0x120] sm:$0xff]  ;;  %v224_v6 = vld [vmem:[#allocation8 + $0x118] sm:$0xff]  ;;  %v223_v7 = vld [vmem:[#allocation8 + $0x110] sm:$0xff] }
  0x55   :  { %286 = vmatpush1.msra.mxu1 %v199_v31  ;;  %v222_v8 = vld [vmem:[#allocation8 + $0x108] sm:$0xff]  ;;  %v221_v9 = vld [vmem:[#allocation8 + $0x100] sm:$0xff]  ;;  %v369_v10 = vld [vmem:[#allocation10 + $0xf8] sm:$0xff] }
  0x56   :  { %287 = vmatprep.subr.mxu1 %v198_v32  ;;  %v353_v11 = vld [vmem:[#allocation10 + $0x78] sm:$0xff]  ;;  %v368_v12 = vld [vmem:[#allocation10 + $0xf0] sm:$0xff]  ;;  %476 = vmatprep.subr.mxu0 %v369_v10  ;;  %v367_v14 = vld [vmem:[#allocation10 + $0xe8] sm:$0xff] }
  0x57   :  { %288 = vmatpush1.msra.mxu1 %v197_v33  ;;  %v352_v13 = vld [vmem:[#allocation10 + $0x70] sm:$0xff]  ;;  %477 = vmatpush3.msra.mxu0 %v353_v11  ;;  %v351_v15 = vld [vmem:[#allocation10 + $0x68] sm:$0xff]  ;;  %v366_v16 = vld [vmem:[#allocation10 + $0xe0] sm:$0xff] }
  0x58   :  { %289 = vmatprep.subr.mxu1 %v196_v34  ;;  %478 = vmatprep.subr.mxu0 %v368_v12  ;;  %v350_v17 = vld [vmem:[#allocation10 + $0x60] sm:$0xff]  ;;  %v365_v18 = vld [vmem:[#allocation10 + $0xd8] sm:$0xff]  ;;  %v364_v20 = vld [vmem:[#allocation10 + $0xd0] sm:$0xff]  ;;  %v102_v34 = vlaneseq }
  0x59   :  { %290 = vmatpush1.msra.mxu1 %v195_v35  ;;  %479 = vmatpush3.msra.mxu0 %v352_v13  ;;  %v349_v19 = vld [vmem:[#allocation10 + $0x58] sm:$0xff]  ;;  %v348_v21 = vld [vmem:[#allocation10 + $0x50] sm:$0xff]  ;;  %v363_v22 = vld [vmem:[#allocation10 + $0xc8] sm:$0xff] }
  0x5a   :  { %291 = vmatprep.subr.mxu1 %v194_v36  ;;  %480 = vmatprep.subr.mxu0 %v367_v14  ;;  %v347_v23 = vld [vmem:[#allocation10 + $0x48] sm:$0xff]  ;;  %v362_v24 = vld [vmem:[#allocation10 + $0xc0] sm:$0xff]  ;;  %v361_v26 = vld [vmem:[#allocation10 + $0xb8] sm:$0xff]  ;;  %v103_v35 = vshrl.u32 %v102_v34, 7 }
  0x5b   :  { %292 = vmatpush1.msra.mxu1 %v193_v37  ;;  %481 = vmatpush3.msra.mxu0 %v351_v15  ;;  %v346_v25 = vld [vmem:[#allocation10 + $0x40] sm:$0xff]  ;;  %v345_v27 = vld [vmem:[#allocation10 + $0x38] sm:$0xff]  ;;  %v360_v28 = vld [vmem:[#allocation10 + $0xb0] sm:$0xff] }
  0x5c   :  { %293 = vmatprep.subr.mxu1 %v192_v38  ;;  %482 = vmatprep.subr.mxu0 %v366_v16  ;;  %v344_v29 = vld [vmem:[#allocation10 + $0x30] sm:$0xff]  ;;  %v359_v30 = vld [vmem:[#allocation10 + $0xa8] sm:$0xff]  ;;  %v358_v32 = vld [vmem:[#allocation10 + $0xa0] sm:$0xff]  ;;  %v104_v36 = vsub.s32 0, %v103_v35  ;;  %v108_v38 = vsub.s32 1, %v103_v35 }
  0x5d   :  { %294 = vmatpush1.msra.mxu1 %v191_v39  ;;  %483 = vmatpush3.msra.mxu0 %v350_v17  ;;  %v343_v31 = vld [vmem:[#allocation10 + $0x28] sm:$0xff]  ;;  %v342_v33 = vld [vmem:[#allocation10 + $0x20] sm:$0xff]  ;;  %v100_v37 = vld [vmem:[#allocation7] sm:$0x3] }
  0x5e   :  { %295 = vmatprep.subr.mxu1 %v190_v40  ;;  %484 = vmatprep.subr.mxu0 %v365_v18  ;;  %v105_v39 = vrot.slane %v100_v37, %v104_v36  ;;  %v109_v40 = vrot.slane %v100_v37, %v108_v38 }
  0x5f   :  { %296 = vmatpush1.msra.mxu1 %v189_v41  ;;  %485 = vmatpush3.msra.mxu0 %v349_v19 }
  0x60   :  { %297 = vmatprep.subr.mxu1 %v252_v42  ;;  %486 = vmatprep.subr.mxu0 %v364_v20 }
  0x61   :  { %298 = vmatpush2.msra.mxu1 %v251_v43  ;;  %487 = vmatpush3.msra.mxu0 %v348_v21 }
  0x62   :  { %299 = vmatprep.subr.mxu1 %v250_v44  ;;  %488 = vmatprep.subr.mxu0 %v363_v22 }
  0x63   :  { %300 = vmatpush2.msra.mxu1 %v249_v45  ;;  %489 = vmatpush3.msra.mxu0 %v347_v23 }
  0x64   :  { %301 = vmatprep.subr.mxu1 %v248_v46  ;;  %490 = vmatprep.subr.mxu0 %v362_v24 }
  0x65   :  { %302 = vmatpush2.msra.mxu1 %v247_v47  ;;  %491 = vmatpush3.msra.mxu0 %v346_v25  ;;  %v357_v47 = vld [vmem:[#allocation10 + $0x98] sm:$0xff] }
  0x66   :  { %303 = vmatprep.subr.mxu1 %v246_v48  ;;  %492 = vmatprep.subr.mxu0 %v361_v26  ;;  %v341_v48 = vld [vmem:[#allocation10 + $0x18] sm:$0xff] }
  0x67   :  { %304 = vmatpush2.msra.mxu1 %v245_v49  ;;  %493 = vmatpush3.msra.mxu0 %v345_v27  ;;  %v356_v49 = vld [vmem:[#allocation10 + $0x90] sm:$0xff] }
  0x68   :  { %305 = vmatprep.subr.mxu1 %v244_v50  ;;  %494 = vmatprep.subr.mxu0 %v360_v28  ;;  %v340_v50 = vld [vmem:[#allocation10 + $0x10] sm:$0xff] }
  0x69   :  { %306 = vmatpush2.msra.mxu1 %v243_v51  ;;  %495 = vmatpush3.msra.mxu0 %v344_v29  ;;  %v355_v51 = vld [vmem:[#allocation10 + $0x88] sm:$0xff] }
  0x6a   :  { %307 = vmatprep.subr.mxu1 %v242_v52  ;;  %496 = vmatprep.subr.mxu0 %v359_v30  ;;  %v339_v52 = vld [vmem:[#allocation10 + $0x8] sm:$0xff] }
  0x6b   :  { %308 = vmatpush2.msra.mxu1 %v241_v53  ;;  %497 = vmatpush3.msra.mxu0 %v343_v31  ;;  %v354_v53 = vld [vmem:[#allocation10 + $0x80] sm:$0xff] }
  0x6c   :  { %309 = vmatprep.subr.mxu1 %v240_v54  ;;  %498 = vmatprep.subr.mxu0 %v358_v32  ;;  %v338_v54 = vld [vmem:[#allocation10] sm:$0xff] }
  0x6d   :  { %310 = vmatpush2.msra.mxu1 %v239_v55  ;;  %499 = vmatpush3.msra.mxu0 %v342_v33  ;;  %v253_v55 = vld [vmem:[%s733_s4] sm:$0x3]  ;;  %s664_s4 = smov [#allocation11]  }
  0x6e   :  { %311 = vmatprep.subr.mxu1 %v238_v56  ;;  %500 = vmatprep.subr.mxu0 %v357_v47  ;;  %v258_v56 = vrot.slane %v253_v55, %v104_v36  ;;  %s463_s29 = sshll.u32 %s664_s4, 4  ;;  %s464_s29 = int_to_ptr.vmem [resolvable:$true] %s463_s29 }
  0x6f   :  { %312 = vmatpush2.msra.mxu1 %v237_v57  ;;  %501 = vmatpush3.msra.mxu0 %v341_v48  ;;  %v262_v57 = vrot.slane %v253_v55, %v108_v38  ;;  %s626_s30 = scalar_lea.vmem %s464_s29, 128  ;;  %p631_p12 = scmp.lt.s32.totalorder %s464_s29, %s464_s29 }
  0x70   :  { %313 = vmatprep.subr.mxu1 %v236_v58  ;;  %502 = vmatprep.subr.mxu0 %v356_v49  ;;  %p627_p11 = scmp.ne.s32.totalorder %s464_s29, %s626_s30  ;;  %p632_p13 = scmp.lt.s32.totalorder %s626_s30, %s626_s30 }
  0x71   :  { %314 = vmatpush2.msra.mxu1 %v235_v59  ;;  %503 = vmatpush3.msra.mxu0 %v340_v50 }
  0x72   :  { %315 = vmatprep.subr.mxu1 %v234_v60  ;;  %504 = vmatprep.subr.mxu0 %v355_v51  ;;  %p633_p0 = por %p632_p13, %p631_p12 }
  0x73   :  { %316 = vmatpush2.msra.mxu1 %v233_v61  ;;  %505 = vmatpush3.msra.mxu0 %v339_v52 }
  0x74   :  { %317 = vmatprep.subr.mxu1 %v232_v62  ;;  %506 = vmatprep.subr.mxu0 %v354_v53  ;;  %p634_p1 = pnand %p633_p0, %p627_p11 }
  0x75   :  { %318 = vmatpush2.msra.mxu1 %v231_v63  ;;  %507 = vmatpush3.msra.mxu0 %v338_v54 }
  0x76   :  { %319 = vmatprep.subr.mxu1 %v230_v0 }
  0x77   :  { %320 = vmatpush2.msra.mxu1 %v229_v1 }
  0x78   :  { %321 = vmatprep.subr.mxu1 %v228_v2  ;;  %v475_v2 = vld [vmem:[%s735_s6] ss:$0 sm:$0xff] }
  0x79   :  { %322 = vmatpush2.msra.mxu1 %v227_v3 }
  0x7a   :  { %323 = vmatprep.subr.mxu1 %v226_v4 }
  0x7b   :  { %324 = vmatpush2.msra.mxu1 %v225_v5 }
  0x7c   :  { %325 = vmatprep.subr.mxu1 %v224_v6 }
  0x7d   :  { %326 = vmatpush2.msra.mxu1 %v223_v7 }
  0x7e   :  { %327 = vmatprep.subr.mxu1 %v222_v8 }
  0x7f   :  { %328 = vmatpush2.msra.mxu1 %v221_v9 }
 0x106   :  { %v182_v41 = vpop.f32.mrf.mxu0 }
 0x107   :  { %v183_v42 = vadd.f32 %v182_v41, %v105_v39 }
 0x108   :  { %v184_v43 = vpop.f32.mrf.mxu0 }
 0x109   :  { %v185_v44 = vadd.f32 %v184_v43, %v109_v40  ;;  %v187_v46 = vmax.f32 %v183_v42, 0.0 }
 0x10b   :  { %v188_v45 = vmax.f32 %v185_v44, 0.0 }
 0x10d   :  { %329 = vmatprep.mubr.f32.mxu1 %v188_v45 }
 0x10e   :  { %330 = vmatmul.mubr.f32.vlgmr.msra.gmra.mxu1 %v187_v46 }
 0x1ce   :  { %v331_v58 = vpop.f32.mrf.mxu1 }
 0x1cf   :  { %v332_v59 = vadd.f32 %v331_v58, %v258_v56 }
 0x1d0   :  { %v333_v60 = vpop.f32.mrf.mxu1 }
 0x1d1   :  { %v334_v61 = vadd.f32 %v333_v60, %v262_v57  ;;  %v336_v63 = vmax.f32 %v332_v59, 0.0 }
 0x1d3   :  { %v337_v62 = vmax.f32 %v334_v61, 0.0 }
 0x1d5   :  { %441 = vmatprep.mubr.f32.mxu0 %v337_v62 }
 0x1d6   :  { %442 = vmatmul.mubr.f32.vlgmr.msra.gmra.mxu0 %v336_v63 }
 0x296   :  { %v508_v0 = vpop.f32.mrf.mxu0 }
 0x298   :  { %v509_v1 = vpop.f32.mrf.mxu0 }
 0x299   :  { %v510_v3 = vadd.f32 %v509_v1, %v508_v0 }
 0x29b   :  { %v444_v4 = vadd.f32 %v510_v3, %v475_v2 }
 0x29d   :  { %447 = vmax.xlane.f32.xlu0 %v444_v4 }
 0x326   :  { %v448_v5 = vpop.xlane.xlu0 %447 }
 0x327   :  { %v449_v6 = vsub.f32 %v444_v4, %v448_v5 }
 0x329   :  { %v450_v7 = vmul.f32 1.442695, %v449_v6 }
 0x32b   :  { %522 = vpow2.f32 %v450_v7 }
 0x338   :  { %v523_v8 = vpop.eup %522 }
 0x339   :  { %452 = vadd.xlane.f32.xlu0 %v523_v8 }
 0x3c2   :  { %v453_v9 = vpop.xlane.xlu0 %452 }
 0x3c3   :  { %524 = vrcp.f32 %v453_v9 }
 0x3d0   :  { %v525_v10 = vpop.eup %524 }
 0x3d1   :  { %v455_v11 = vmul.f32 %v525_v10, %v523_v8 }
 0x3d3   :  { %456 = vst [vmem:[#allocation11] sm:$0xff] %v455_v11 }
 0x3d4   :  { %637 = shalt.err (!%p634_p1)
}
 0x3d5   :  { %466 = dma.vmem_to_hbm [thread:$0]  %s464_s29, 128, %s736_s7, [#allocation4]  }
 0x3d6   :  { %652 = dma.done.wait [#allocation4], 128  }
 0x3d7   :  { %653 = vsyncadd [#allocation4], 4294967168 }
 0x3d8   :  { %470 = vsyncpa [#allocation3], 1 }
 0x3d9   :  { %471 = vsyncpa [#allocation6], 1 }
 0x3da   :  { %472 = vsyncpa [#allocation9], 1 }
 0x3db   :  { %473 = vsyncpa [#allocation4], 1 }

</bundles_post_ra>
